<compile_context>
chip_gen: v6e
topology: v6e:2x2x1
jax: 0.10.0
libtpu: 0.0.40
codegen_flags: <defaults>
</compile_context>

<pallas_src>
import math
import jax
import jax.numpy as jnp
from jax.experimental import pallas as pl
from jax.experimental.pallas import tpu as pltpu


def _round_up(x, m):
    return ((x + m - 1) // m) * m


# --------------------------------------------------------------------------- #
# Kernels
# --------------------------------------------------------------------------- #
def _lora_kernel_fullk(x_ref, wT_ref, bias_ref, xa_ref, bTs_ref, o_ref):
    """Grid = (M, N); tk == K_pad so no reduction axis / no scratch."""
    base = jnp.dot(x_ref[...], wT_ref[...], preferred_element_type=jnp.float32)
    lora = jnp.dot(xa_ref[...], bTs_ref[...], preferred_element_type=jnp.float32)
    o_ref[...] = (base + bias_ref[...] + lora).astype(o_ref.dtype)


def _lora_kernel_ktiled(x_ref, wT_ref, bias_ref, xa_ref, bTs_ref, o_ref, acc_ref):
    """Grid = (M, N, K); K innermost reduction, f32 accumulator scratch."""
    k = pl.program_id(2)

    @pl.when(k == 0)
    def _():
        acc_ref[...] = jnp.zeros_like(acc_ref)

    acc_ref[...] += jnp.dot(x_ref[...], wT_ref[...],
                            preferred_element_type=jnp.float32)

    @pl.when(k == pl.num_programs(2) - 1)
    def _():
        lora = jnp.dot(xa_ref[...], bTs_ref[...],
                       preferred_element_type=jnp.float32)
        o_ref[...] = (acc_ref[...] + bias_ref[...] + lora).astype(o_ref.dtype)


def _linear_kernel_fullk(x_ref, wT_ref, bias_ref, o_ref):
    """merge_weights path, single K step."""
    base = jnp.dot(x_ref[...], wT_ref[...], preferred_element_type=jnp.float32)
    o_ref[...] = (base + bias_ref[...]).astype(o_ref.dtype)


def _linear_kernel_ktiled(x_ref, wT_ref, bias_ref, o_ref, acc_ref):
    """merge_weights path, K-tiled."""
    k = pl.program_id(2)

    @pl.when(k == 0)
    def _():
        acc_ref[...] = jnp.zeros_like(acc_ref)

    acc_ref[...] += jnp.dot(x_ref[...], wT_ref[...],
                            preferred_element_type=jnp.float32)

    @pl.when(k == pl.num_programs(2) - 1)
    def _():
        o_ref[...] = (acc_ref[...] + bias_ref[...]).astype(o_ref.dtype)


# --------------------------------------------------------------------------- #
# VMEM budget & tile selection
# --------------------------------------------------------------------------- #
def _vmem_budget_bytes():
    """Per-generation VMEM limit: ~half of physical capacity, 32-64 MiB."""
    cap = 128 * 1024 * 1024
    try:
        info = pltpu.get_tpu_info()
        cap = int(getattr(info, "vmem_capacity_bytes", cap)) or cap
    except Exception:
        pass
    return max(32 * 1024 * 1024, min(cap // 2, 64 * 1024 * 1024))


def _choose_tiles(in_features, out_features, rank_pad, itemsize, vmem_limit):
    """Largest (tm_cap, tn, tk) whose double-buffered footprint fits."""
    usable = int(0.85 * vmem_limit)
    K_req = _round_up(in_features, 128)
    N_req = _round_up(out_features, 128)
    out_itemsize = 4  # conservative (f32 output)

    for tm_cap in (512, 256, 128, 64, 32, 16, 8):
        for tn_cand in (512, 256, 128):
            tn = min(tn_cand, N_req)
            for tk_cand in (K_req, 2048, 1024, 512, 256, 128):
                tk = min(tk_cand, K_req)
                K_pad = _round_up(in_features, tk)
                N_pad = _round_up(out_features, tn)
                k_tiled = (K_pad // tk) > 1
                footprint = (
                    2 * itemsize * (tm_cap * tk + tk * tn
                                    + tm_cap * rank_pad + rank_pad * tn)
                    + 2 * 4 * tn                           # bias (f32)
                    + 2 * out_itemsize * tm_cap * tn       # output
                    + (4 * tm_cap * tn if k_tiled else 0)  # acc scratch
                )
                if footprint <= usable:
                    return tm_cap, tn, tk, K_pad, N_pad

    tn = min(128, N_req)
    tk = min(128, K_req)
    return 8, tn, tk, _round_up(in_features, tk), _round_up(out_features, tn)


# --------------------------------------------------------------------------- #
# LoRA layer wrapper (caches the padded / transposed / folded weights)
# --------------------------------------------------------------------------- #
class LoRALayerPallas:
    def __init__(self, weight, bias, lora_A, lora_B, alpha, rank, *,
                 dropout=0.1, merge_weights=False,
                 compute_dtype=jnp.bfloat16, out_dtype=None, tiles=None):
        del dropout  # identity in eval mode (see TODO at top of file)
        self.out_features, self.in_features = weight.shape
        self.rank = int(rank)
        self.scaling = float(alpha) / float(rank)
        self.merge_weights = bool(merge_weights)
        self.compute_dtype = compute_dtype
        self.out_dtype = out_dtype

        self.rank_pad = _round_up(max(self.rank, 1), 128)
        itemsize = jnp.dtype(compute_dtype).itemsize
        self.vmem_limit = int(_vmem_budget_bytes())

        if tiles is not None:
            tm_cap, tn, tk = tiles
            self.tm_cap, self.tn, self.tk = int(tm_cap), int(tn), int(tk)
            self.K_pad = _round_up(self.in_features, self.tk)
            self.N_pad = _round_up(self.out_features, self.tn)
        else:
            (self.tm_cap, self.tn, self.tk,
             self.K_pad, self.N_pad) = _choose_tiles(
                self.in_features, self.out_features, self.rank_pad,
                itemsize, self.vmem_limit)

        # ---- weight-side relayout: cast first, then transpose/pad; cached ----
        if self.merge_weights:
            merged = (weight.astype(jnp.float32)
                      + self.scaling * (lora_B.astype(jnp.float32)
                                        @ lora_A.astype(jnp.float32)))
            w_src = merged.astype(compute_dtype)
        else:
            w_src = weight.astype(compute_dtype)
        wT = jnp.zeros((self.K_pad, self.N_pad), compute_dtype)
        self.wT = wT.at[:self.in_features, :self.out_features].set(w_src.T)

        bias_p = jnp.zeros((1, self.N_pad), jnp.float32)
        self.bias_p = bias_p.at[0, :self.out_features].set(
            bias.astype(jnp.float32))

        if not self.merge_weights:
            # A^T stays unpadded: the hoisted x @ A^T is a tiny XLA dot.
            self.aT_c = lora_A.astype(compute_dtype).T          # [K, rank]
            bTs = jnp.zeros((self.rank_pad, self.N_pad), compute_dtype)
            self.bTs = bTs.at[:self.rank, :self.out_features].set(
                (lora_B.astype(jnp.float32) * self.scaling).T.astype(
                    compute_dtype))

    def __call__(self, x):
        lead_shape = x.shape[:-1]
        x2d = x.reshape(-1, self.in_features)
        T = x2d.shape[0]
        out_dtype = self.out_dtype if self.out_dtype is not None else x.dtype
        cdt = self.compute_dtype

        # ---- M tiling (N/K tiling is fixed per layer) ----
        tm = min(self.tm_cap, _round_up(T, 8))
        gn = self.N_pad // self.tn
        # Keep at least 2 blocks in the parallel grid so v7x's two TensorCores
        # both get work when the N axis collapsed to a single tile.
        if gn == 1 and tm >= 16 and _round_up(T, tm) == tm:
            tm = _round_up((tm + 1) // 2, 8)
        T_pad = _round_up(T, tm)
        gm = T_pad // tm
        gk = self.K_pad // self.tk

        # ---- activation-side prep: cast first, then pad ----
        x2d_c = x2d.astype(cdt)
        x_p = jnp.zeros((T_pad, self.K_pad), cdt)
        x_p = x_p.at[:T, :self.in_features].set(x2d_c)

        flops = 2.0 * T * self.in_features * self.out_features
        bytes_accessed = (x_p.size * x_p.dtype.itemsize
                          + self.wT.size * self.wT.dtype.itemsize
                          + self.bias_p.size * 4
                          + T_pad * self.N_pad * jnp.dtype(out_dtype).itemsize)

        if self.merge_weights:
            inputs = (x_p, self.wT, self.bias_p)
        else:
            # Hoisted LoRA first matmul: computed once, not once per N tile.
            xa = jnp.dot(x2d_c, self.aT_c,
                         preferred_element_type=jnp.float32)    # [T, rank]
            xa_p = jnp.zeros((T_pad, self.rank_pad), cdt)
            xa_p = xa_p.at[:T, :self.rank].set(xa.astype(cdt))
            inputs = (x_p, self.wT, self.bias_p, xa_p, self.bTs)
            flops += (2.0 * T * self.in_features * self.rank
                      + 2.0 * T * self.rank_pad * self.out_features)
            bytes_accessed += (xa_p.size * xa_p.dtype.itemsize
                               + self.bTs.size * self.bTs.dtype.itemsize)

        if gk == 1:
            grid = (gm, gn)
            x_map = lambda i, j: (i, 0)
            w_map = lambda i, j: (0, j)
            b_map = lambda i, j: (0, j)
            xa_map = lambda i, j: (i, 0)
            bs_map = lambda i, j: (0, j)
            o_map = lambda i, j: (i, j)
            scratch = []
            dims = ("parallel", "parallel")
            kernel = (_linear_kernel_fullk if self.merge_weights
                      else _lora_kernel_fullk)
        else:
            grid = (gm, gn, gk)
            x_map = lambda i, j, k: (i, k)
            w_map = lambda i, j, k: (k, j)
            b_map = lambda i, j, k: (0, j)
            xa_map = lambda i, j, k: (i, 0)
            bs_map = lambda i, j, k: (0, j)
            o_map = lambda i, j, k: (i, j)
            scratch = [pltpu.VMEM((tm, self.tn), jnp.float32)]
            dims = ("parallel", "parallel", "arbitrary")
            kernel = (_linear_kernel_ktiled if self.merge_weights
                      else _lora_kernel_ktiled)

        in_specs = [pl.BlockSpec((tm, self.tk), x_map),
                    pl.BlockSpec((self.tk, self.tn), w_map),
                    pl.BlockSpec((1, self.tn), b_map)]
        if not self.merge_weights:
            in_specs += [pl.BlockSpec((tm, self.rank_pad), xa_map),
                         pl.BlockSpec((self.rank_pad, self.tn), bs_map)]

        out2d = pl.pallas_call(
            kernel,
            out_shape=jax.ShapeDtypeStruct((T_pad, self.N_pad), out_dtype),
            grid_spec=pltpu.PrefetchScalarGridSpec(
                num_scalar_prefetch=0,
                grid=grid,
                in_specs=in_specs,
                out_specs=pl.BlockSpec((tm, self.tn), o_map),
                scratch_shapes=scratch,
            ),
            compiler_params=pltpu.CompilerParams(
                dimension_semantics=dims,
                vmem_limit_bytes=self.vmem_limit,
            ),
            cost_estimate=pl.CostEstimate(
                flops=int(flops), transcendentals=0,
                bytes_accessed=int(bytes_accessed)),
        )(*inputs)

        return out2d[:T, :self.out_features].reshape(
            *lead_shape, self.out_features)


def lora_forward(x, weight, bias, lora_A, lora_B, alpha, rank, **kwargs):
    """One-shot functional wrapper (prefer LoRALayerPallas to cache weights)."""
    return LoRALayerPallas(weight, bias, lora_A, lora_B, alpha, rank,
                           **kwargs)(x)


def init_lora_params(key, in_features, out_features, rank, dtype=jnp.float32):
    """Deterministic init mirroring LoRALayer.reset_parameters()."""
    k_w, k_a, k_b = jax.random.split(key, 3)
    # kaiming_uniform_(a=sqrt(5)) on [fan_out, fan_in] -> U(-b, b), b=1/sqrt(fan_in)
    bound_w = 1.0 / math.sqrt(in_features)
    weight = jax.random.uniform(k_w, (out_features, in_features), dtype,
                                minval=-bound_w, maxval=bound_w)
    bound_a = 1.0 / math.sqrt(in_features)
    lora_A = jax.random.uniform(k_a, (rank, in_features), dtype,
                                minval=-bound_a, maxval=bound_a)
    lora_B = jnp.zeros((out_features, rank), dtype)
    bound_b = 1.0 / math.sqrt(in_features)
    bias = jax.random.uniform(k_b, (out_features,), dtype,
                              minval=-bound_b, maxval=bound_b)
    return weight, bias, lora_A, lora_B


if __name__ == "__main__":
    in_features, out_features, rank, alpha = 32, 32, 4, 1.0
    batch, seq = 2, 8

    key = jax.random.PRNGKey(0)
    k_x, k_p = jax.random.split(key)
    x = jax.random.normal(k_x, (batch, seq, in_features), jnp.float32)
    weight, bias, lora_A, lora_B = init_lora_params(
        k_p, in_features, out_features, rank)
    # make lora_B nonzero so the LoRA branch is exercised numerically
    lora_B = 0.01 * jax.random.normal(jax.random.PRNGKey(1),
                                      (out_features, rank), jnp.float32)

    # pure-JAX reference (dropout = identity in eval mode)
    scaling = alpha / rank
    ref = (x @ weight.T + bias) + (x @ lora_A.T @ lora_B.T) * scaling

    # 1) f32-operand path (single-K kernel, no scratch): tight check
    layer_f32 = LoRALayerPallas(weight, bias, lora_A, lora_B, alpha, rank,
                                compute_dtype=jnp.float32)
    out_f32 = jax.block_until_ready(layer_f32(x))
    assert out_f32.shape == (batch, seq, out_features)
    assert jnp.allclose(out_f32, ref, atol=1e-4, rtol=1e-4), \
        "f32 kernel mismatch vs reference"

    # 2) default bf16-operand / f32-accumulate path: looser check
    layer_bf16 = LoRALayerPallas(weight, bias, lora_A, lora_B, alpha, rank)
    out_bf16 = jax.block_until_ready(layer_bf16(x))
    assert out_bf16.shape == (batch, seq, out_features)
    assert jnp.allclose(out_bf16, ref, atol=5e-2, rtol=5e-2), \
        "bf16 kernel mismatch vs reference"

    # 3) merge_weights path (W' = W + scaling*B@A, single GEMM): tight check
    layer_m = LoRALayerPallas(weight, bias, lora_A, lora_B, alpha, rank,
                              merge_weights=True, compute_dtype=jnp.float32)
    out_m = jax.block_until_ready(layer_m(x))
    assert jnp.allclose(out_m, ref, atol=1e-4, rtol=1e-4), \
        "merged-weight kernel mismatch vs reference"

    # 4) K-tiled accumulator path (forced small tiles on a larger layer)
    in2, out2 = 256, 256
    w2, b2, a2, bb2 = init_lora_params(jax.random.PRNGKey(2), in2, out2, rank)
    bb2 = 0.01 * jax.random.normal(jax.random.PRNGKey(3), (out2, rank),
                                   jnp.float32)
    x2 = jax.random.normal(jax.random.PRNGKey(4), (batch, seq, in2),
                           jnp.float32)
    ref2 = (x2 @ w2.T + b2) + (x2 @ a2.T @ bb2.T) * scaling
    layer_kt = LoRALayerPallas(w2, b2, a2, bb2, alpha, rank,
                               compute_dtype=jnp.float32,
                               tiles=(128, 128, 128))   # gk = 2, gn = 2
    out_kt = jax.block_until_ready(layer_kt(x2))
    assert jnp.allclose(out_kt, ref2, atol=1e-4, rtol=1e-4), \
        "k-tiled kernel mismatch vs reference"

    print("KERNEL_OK")
</pallas_src>

<mosaic_0001>
module attributes {stable_mosaic.version = 11 : i64} {
  func.func @_lora_kernel_fullk(%arg0: i32, %arg1: i32, %arg2: memref<8x128xf32, #tpu.memory_space<vmem>>, %arg3: memref<128x128xf32, #tpu.memory_space<vmem>>, %arg4: memref<1x128xf32, #tpu.memory_space<vmem>>, %arg5: memref<8x128xf32, #tpu.memory_space<vmem>>, %arg6: memref<128x128xf32, #tpu.memory_space<vmem>>, %arg7: memref<8x128xf32, #tpu.memory_space<vmem>>) attributes {dimension_semantics = [#tpu.dimension_semantics<parallel>, #tpu.dimension_semantics<parallel>], iteration_bounds = array<i64: 2, 1>, scalar_prefetch = 0 : i64, scratch_operands = 0 : i64, tpu.core_type = #tpu.core_type<tc>, window_params = [{transform_indices = @transform_0, window_bounds = array<i64: 8, 128>}, {transform_indices = @transform_1, window_bounds = array<i64: 128, 128>}, {transform_indices = @transform_2, window_bounds = array<i64: 1, 128>}, {transform_indices = @transform_3, window_bounds = array<i64: 8, 128>}, {transform_indices = @transform_4, window_bounds = array<i64: 128, 128>}, {transform_indices = @transform_5, window_bounds = array<i64: 8, 128>}]} {
    %c0 = arith.constant 0 : index
    %c0_0 = arith.constant 0 : index
    %0 = vector.load %arg2[%c0, %c0_0] : memref<8x128xf32, #tpu.memory_space<vmem>>, vector<8x128xf32>
    %c0_1 = arith.constant 0 : index
    %c0_2 = arith.constant 0 : index
    %1 = vector.load %arg3[%c0_1, %c0_2] : memref<128x128xf32, #tpu.memory_space<vmem>>, vector<128x128xf32>
    %cst = arith.constant dense<0.000000e+00> : vector<8x128xf32>
    %2 = tpu.matmul %0, %1, %cst {dimension_numbers = #tpu.dot_dimension_numbers<[1], [0], [0], [1], [0, 0, 1, 1], [], []>} : vector<8x128xf32>, vector<128x128xf32>, vector<8x128xf32> -> vector<8x128xf32>
    %c0_3 = arith.constant 0 : index
    %c0_4 = arith.constant 0 : index
    %3 = vector.load %arg5[%c0_3, %c0_4] : memref<8x128xf32, #tpu.memory_space<vmem>>, vector<8x128xf32>
    %c0_5 = arith.constant 0 : index
    %c0_6 = arith.constant 0 : index
    %4 = vector.load %arg6[%c0_5, %c0_6] : memref<128x128xf32, #tpu.memory_space<vmem>>, vector<128x128xf32>
    %cst_7 = arith.constant dense<0.000000e+00> : vector<8x128xf32>
    %5 = tpu.matmul %3, %4, %cst_7 {dimension_numbers = #tpu.dot_dimension_numbers<[1], [0], [0], [1], [0, 0, 1, 1], [], []>} : vector<8x128xf32>, vector<128x128xf32>, vector<8x128xf32> -> vector<8x128xf32>
    %c0_8 = arith.constant 0 : index
    %c0_9 = arith.constant 0 : index
    %6 = vector.load %arg4[%c0_8, %c0_9] : memref<1x128xf32, #tpu.memory_space<vmem>>, vector<1x128xf32>
    %7 = vector.broadcast %6 : vector<1x128xf32> to vector<8x128xf32>
    %8 = arith.addf %2, %7 : vector<8x128xf32>
    %9 = arith.addf %8, %5 : vector<8x128xf32>
    %c0_10 = arith.constant 0 : index
    %c0_11 = arith.constant 0 : index
    %10 = vector.load %arg7[%c0_10, %c0_11] : memref<8x128xf32, #tpu.memory_space<vmem>>, vector<8x128xf32>
    tpu.vector_store %arg7[%c0_10, %c0_11], %9 {strides = array<i32>} : memref<8x128xf32, #tpu.memory_space<vmem>>, vector<8x128xf32>,
    return
  }
  func.func @transform_0(%arg0: i32, %arg1: i32) -> (i32, i32) {
    %c0_i32 = arith.constant 0 : i32
    %c0_i32_0 = arith.constant 0 : i32
    return %arg0, %c0_i32 : i32, i32
  }
  func.func @transform_1(%arg0: i32, %arg1: i32) -> (i32, i32) {
    %c0_i32 = arith.constant 0 : i32
    %c0_i32_0 = arith.constant 0 : i32
    return %c0_i32, %arg1 : i32, i32
  }
  func.func @transform_2(%arg0: i32, %arg1: i32) -> (i32, i32) {
    %c0_i32 = arith.constant 0 : i32
    %c0_i32_0 = arith.constant 0 : i32
    return %c0_i32, %arg1 : i32, i32
  }
  func.func @transform_3(%arg0: i32, %arg1: i32) -> (i32, i32) {
    %c0_i32 = arith.constant 0 : i32
    %c0_i32_0 = arith.constant 0 : i32
    return %arg0, %c0_i32 : i32, i32
  }
  func.func @transform_4(%arg0: i32, %arg1: i32) -> (i32, i32) {
    %c0_i32 = arith.constant 0 : i32
    %c0_i32_0 = arith.constant 0 : i32
    return %c0_i32, %arg1 : i32, i32
  }
  func.func @transform_5(%arg0: i32, %arg1: i32) -> (i32, i32) {
    %c0_i32 = arith.constant 0 : i32
    return %arg0, %arg1 : i32, i32
  }
}

</mosaic_0001>

<bundles_post_ra>
// kernel: tpu_custom_call.1
= control target key start
LH: loop header
LB: loop body
LE: loop exit
PB: predicated region body
PF: predicated region fallthrough
CT: control target
= control target key end

     0   :  { %s1389_s0 = inlined_call_operand.hbm [shape: f32[16,128], index: 0, kind: input, shape index: {}]   ;;  %s1390_s1 = inlined_call_operand.hbm [shape: f32[128,128], index: 1, kind: input, shape index: {}]   ;;  %s1391_s2 = inlined_call_operand.vmem [shape: f32[1,128], index: 2, kind: input, shape index: {}]   ;;  %s1392_s3 = inlined_call_operand.hbm [shape: f32[16,128], index: 3, kind: input, shape index: {}]   ;;  %s1393_s4 = inlined_call_operand.hbm [shape: f32[128,128], index: 4, kind: input, shape index: {}]   ;;  %s1394_s5 = inlined_call_operand.hbm [shape: f32[16,128], index: 5, kind: output, shape index: {}]  }
   0x1   :  { %1402 = sst [smem:[#allocation17_spill]] %s1389_s0 }
   0x2   :  { %1403 = sst [smem:[#allocation18_spill]] %s1390_s1 }
   0x3   :  { %10 = vsyncpa [#allocation3], 0 }
   0x4   :  { %12 = vsyncpa [#allocation3 + $0x1], 0 }
   0x5   :  { %13 = vsyncpa [#allocation6], 0 }
   0x6   :  { %14 = vsyncpa [#allocation4], 0 }
   0x7   :  { %16 = vsyncpa [#allocation4 + $0x1], 0  ;;  %s1136_s18 = smov 0   ;;  %s1138_s19 = smov 0  }
   0x8   :  { %s1140_s20 = smov 0   ;;  %s1142_s21 = smov 0  }
   0x9   :  { %s1144_s22 = smov 0   ;;  %s1146_s23 = smov 0  }
   0xa LB: > { %s1167_s24 = sadd.s32 4294967295, %s1095_s23   ;;  %s678_s25 = sadd.s32 4294967294, %s1095_s23   ;;  %s1095_s23 = sphi %s1146_s23, %s22_s23   ;;  %s1091_s22 = sphi %s1144_s22, %s1432_s22   ;;  %s1087_s21 = sphi %s1142_s21, %s1431_s21   ;;  %s1083_s20 = sphi %s1140_s20, %s1430_s20   ;;  %s1079_s19 = sphi %s1138_s19, %s1429_s19   ;;  %s1075_s18 = sphi %s1136_s18, %s1428_s18  }
   0xb   : > { %p54_p0 = scmp.ne.s32.totalorder %s1079_s19, %s1075_s18  ;;  %p1399_p1 = scmp.eq.s32.totalorder %s1167_s24, 0 }
   0xc   : > { %p190_p3 = scmp.eq.s32.totalorder %s678_s25, 1  ;;  %p679_p5 = scmp.ge.s32.totalorder %s1095_s23, 1 }
   0xd   : > { %p1176_p4 = por %p1399_p1, %p54_p0  ;;  %p197_p7 = scmp.lt.s32.totalorder %s1095_s23, 3 }
   0xe   : > { %p1181_p6 = por %p190_p3, %p54_p0  ;;  %s1097_s29 = smov [#allocation5]  }
   0xf   : > { %p1186_p8 = pnand %p679_p5, %p197_p7  ;;  %s211_s30 = sshll.u32 %s1097_s29, 4  ;;  %s212_s30 = int_to_ptr.vmem [resolvable:$true] %s211_s30 }
  0x10   : > { %s1405_s27 = scalar_select %p1181_p6, 1, 0 }
  0x11   : > { %p817_p9 = pneg %p1186_p8  ;;  %s34_s7 = sadd.s32 1, %s1091_s22 }
  0x12   : > { %1406 = sst [smem:[#allocation15_spill]] %s1405_s27  ;;  %s906_s8 = scalar_lea.vmem %s212_s30, 2048 }
  0x13   : > { %p1195_p11 = pnand %p817_p9, %p1399_p1  ;;  %p907_p13 = scmp.ne.s32.totalorder %s212_s30, %s906_s8 }
  0x14   : > { %p914_p5 = scmp.lt.s32.totalorder %s212_s30, %s212_s30  ;;  %p915_p7 = scmp.lt.s32.totalorder %s906_s8, %s906_s8 }
  0x15   : > { %p1400_p12 = pneg %p1195_p11 }
  0x16   : > { %p916_p2 = por %p915_p7, %p914_p5 }
  0x17   : > { %p909_p0 = pnand %p907_p13, %p1400_p12 }
  0x19   : > { %p910_p3 = pneg %p909_p0 }
  0x1b   : > { %p917_p10 = pnand %p916_p2, %p910_p3 }
  0x1d   : > { %920 = shalt.err (!%p917_p10)
}
  0x1e   : > { %s1395_s9 = smov 128   ;;  %s1396_s10 = smov 8  }
  0x1f   : > { %s1409_s1 = sld [smem:[#allocation18_spill]]  ;;  %p36_p2 = scmp.ge.s32.totalorder %s34_s7, 2 }
  0x20   : > { %s41_s13 = sadd.s32 1, %s1083_s20  ;;  %p48_p9 = scmp.ne.s32.totalorder %s1083_s20, %s1079_s19 }
  0x21   : > { %p49_p10 = scmp.eq.s32.totalorder %s1095_s23, 0  ;;  %s1434_s7 = smov (%p36_p2, %s34_s7), 0 }
  0x22   : > { %1410 = sst [smem:[#allocation16_spill]] %s1434_s7  ;;  %p1412_p0 = scmp.eq.s32.totalorder %s1167_s24, 1 }
  0x23   : > { %p1219_p13 = por %p49_p10, %p48_p9  ;;  %s38_s16 = ssub.s32 %s1091_s22, %s1434_s7 }
  0x24   : > { %p1225_p3 = por %p1412_p0, %p48_p9  ;;  %p837_p5 = scmp.lt.s32.totalorder %s1095_s23, 2 }
  0x25   : > { %820 = dma.hbm_to_vmem [thread:$0]  (!%p1195_p11), %s1409_s1, 2048, %s212_s30, [#allocation6], %s1395_s9, %s1395_s9, %s1396_s10  }
  0x26   : > { %p39_p7 = scmp.eq.s32.totalorder %s38_s16, 0  ;;  %s246_s17 = sand.u32 1, %s1095_s23  }
  0x27   : > { %s248_s25 = sand.u32 1, %s1083_s20   ;;  %s685_s8 = sshll.u32 %s1091_s22, 7 }
  0x28   : > { %s1235_s29 = scalar_select %p39_p7, %s1083_s20, %s41_s13  }
  0x29   : > { %s684_s30 = sshll.u32 %s248_s25, 3  ;;  %s1414_s0 = sld [smem:[#allocation17_spill]] }
  0x2a   : > { %s250_s10 = scalar_lea.vmem [#allocation2], %s684_s30  ;;  %p1243_p2 = pnand %p837_p5, %p1219_p13 }
  0x2b   : > { %s257_s1 = sshll.u32 %s250_s10, 4  ;;  %s1250_s13 = scalar_lea.hbm %s1392_s3, %s685_s8  ;;  %s258_s1 = int_to_ptr.vmem [resolvable:$true] %s257_s1 }
  0x2c   : > { %s1252_s25 = scalar_lea.sflag [#allocation3], %s246_s17  ;;  %p1401_p9 = pneg %p1243_p2 }
  0x2d   : > { %s934_s11 = scalar_lea.vmem %s258_s1, 128  ;;  %s1100_s10 = smov [#allocation2]  }
  0x2e   : > { %p935_p10 = scmp.ne.s32.totalorder %s258_s1, %s934_s11  ;;  %s939_s14 = sshll.u32 %s1100_s10, 4  ;;  %s940_s14 = int_to_ptr.vmem [resolvable:$false] %s939_s14 }
  0x2f   : > { %s255_s9 = scalar_lea.hbm %s1414_s0, %s685_s8  ;;  %s941_s12 = scalar_lea.vmem %s940_s14, 256 }
  0x30   : > { %p937_p13 = pnand %p935_p10, %p1401_p9  ;;  %p942_p5 = scmp.lt.s32.totalorder %s258_s1, %s940_s14 }
  0x31   : > { %p943_p7 = scmp.lt.s32.totalorder %s941_s12, %s934_s11 }
  0x32   : > { %p938_p0 = pneg %p937_p13 }
  0x33   : > { %p944_p1 = por %p943_p7, %p942_p5 }
  0x35   : > { %p945_p12 = pnand %p944_p1, %p938_p0 }
  0x37   : > { %948 = shalt.err (!%p945_p12)
}
  0x38   : > { %827 = dma.hbm_to_vmem [thread:$0]  (!%p1243_p2), %s255_s9, 128, %s258_s1, %s1252_s25  }
  0x39   : > { %s268_s7 = scalar_lea.vmem [#allocation7], %s684_s30  ;;  %s1101_s8 = smov [#allocation8]  }
  0x3a   : > { %s275_s17 = sshll.u32 %s268_s7, 4  ;;  %s232_s16 = sshll.u32 %s1101_s8, 4  ;;  %s276_s17 = int_to_ptr.vmem [resolvable:$true] %s275_s17  ;;  %s233_s16 = int_to_ptr.vmem [resolvable:$true] %s232_s16 }
  0x3b   : > { %s960_s0 = scalar_lea.vmem %s233_s16, 2048  ;;  %p1416_p13 = pneg %p1195_p11 }
  0x3c   : > { %p961_p10 = scmp.ne.s32.totalorder %s233_s16, %s960_s0  ;;  %p968_p5 = scmp.lt.s32.totalorder %s233_s16, %s233_s16 }
  0x3d   : > { %p969_p1 = scmp.lt.s32.totalorder %s960_s0, %s960_s0 }
  0x3e   : > { %p963_p9 = pnand %p961_p10, %p1416_p13 }
  0x3f   : > { %p970_p12 = por %p969_p1, %p968_p5 }
  0x40   : > { %p964_p6 = pneg %p963_p9 }
  0x42   : > { %p971_p0 = pnand %p970_p12, %p964_p6 }
  0x44   : > { %974 = shalt.err (!%p971_p0)
}
  0x45   : > { %s1417_s1 = smov 8   ;;  %s1418_s9 = smov 128  }
  0x46   : > { %823 = dma.hbm_to_vmem [thread:$0]  (!%p1195_p11), %s1393_s4, 2048, %s233_s16, [#allocation6], %s1418_s9, %s1418_s9, %s1417_s1  }
  0x47   : > { %s988_s10 = scalar_lea.vmem %s276_s17, 128  ;;  %p1419_p10 = pneg %p1243_p2 }
  0x48   : > { %p989_p7 = scmp.ne.s32.totalorder %s276_s17, %s988_s10  ;;  %s1102_s0 = smov [#allocation7]  }
  0x49   : > { %s993_s14 = sshll.u32 %s1102_s0, 4  ;;  %s994_s14 = int_to_ptr.vmem [resolvable:$false] %s993_s14 }
  0x4a   : > { %p991_p9 = pnand %p989_p7, %p1419_p10  ;;  %s995_s12 = scalar_lea.vmem %s994_s14, 256 }
  0x4b   : > { %p996_p6 = scmp.lt.s32.totalorder %s276_s17, %s994_s14  ;;  %p997_p5 = scmp.lt.s32.totalorder %s995_s12, %s988_s10 }
  0x4c   : > { %p992_p13 = pneg %p991_p9 }
  0x4d   : > { %p998_p1 = por %p997_p5, %p996_p6 }
  0x4f   : > { %p999_p12 = pnand %p998_p1, %p992_p13 }
  0x51   : > { %1002 = shalt.err (!%p999_p12)
}
  0x52   : > { %830 = dma.hbm_to_vmem [thread:$0]  (!%p1243_p2), %s1250_s13, 128, %s276_s17, %s1252_s25  }
  0x53   : > { %284 = sbr.rel (%p1186_p8) target bundleno = 342 (0x156), region = 40  ;;  %s286_s6 = sand.u32 (!%p1186_p8), 1, %s1167_s24  }
  0x54   : > { %s288_s7 = sand.u32 (!%p1186_p8), 1, %s1079_s19   ;;  %s287_s16 = scalar_lea.sflag (!%p1186_p8), [#allocation3], %s286_s6 }
  0x55   : > { %s1286_s8 = sshll.u32 (!%p1186_p8), %s288_s7, 3 }
  0x56   : > { %s290_s1 = scalar_lea.vmem (!%p1186_p8), [#allocation2], %s1286_s8 }
  0x58   : > { %1054 = dma.done.wait (%p1176_p4), %s287_s16, 128  }
  0x59   : > { %1056 = vsyncadd (%p1176_p4), %s287_s16, 4294967168  ;;  %p1420_p11 = scmp.eq.s32.totalorder %s1167_s24, 0 }
  0x5b   : > { %1058 = dma.done.wait (%p1420_p11), [#allocation6], 2048   ;;  %p1421_p8 = pmov %p1420_p11 }
  0x5c   : > { %s303_s27 = scalar_lea.vmem [#allocation7], %s1286_s8 }
  0x5d   : > { %1060 = vsyncadd (%p1421_p8), [#allocation6], 4294965248 }
  0x5e   : > { %1062 = dma.done.wait (%p1176_p4), %s287_s16, 128  }
  0x5f   : > { %1064 = vsyncadd (%p1176_p4), %s287_s16, 4294967168  ;;  %p1422_p2 = pmov %p1421_p8 }
  0x61   : > { %1066 = dma.done.wait (%p1422_p2), [#allocation6], 2048   ;;  %p1423_p0 = pmov %p1422_p2 }
  0x62   : > { %v1103_v0 = vmov 0.0   ;;  %vm1104_vm0 = vmmov 0   ;;  %v378_v1 = vld [vmem:[#allocation8 + $0x78] sm:$0xff]  ;;  %v361_v2 = vld [vmem:[#allocation5 + $0x78] sm:$0xff]  ;;  %v377_v3 = vld [vmem:[#allocation8 + $0x70] sm:$0xff]  ;;  %s696_s28 = sshll.u32 %s1087_s21, 7 }
  0x63   : > { %1068 = vsyncadd (%p1423_p0), [#allocation6], 4294965248  ;;  %733 = vmatprep.subr.mxu0 %v1103_v0  ;;  %768 = vmatprep.subr.mxu1 %v1103_v0  ;;  %v360_v4 = vld [vmem:[#allocation5 + $0x70] sm:$0xff]  ;;  %v376_v5 = vld [vmem:[#allocation8 + $0x68] sm:$0xff]  ;;  %s341_s13 = scalar_lea.vmem [#allocation9], %s1286_s8  ;;  %s541_s30 = scalar_lea.hbm %s1394_s5, %s696_s28 }
  0x64   : > { %765 = vmatprep.mubr.msk.f32.mxu0 %vm1104_vm0, %v1103_v0  ;;  %800 = vmatprep.mubr.msk.f32.mxu1 %vm1104_vm0, %v1103_v0  ;;  %v359_v6 = vld [vmem:[#allocation5 + $0x68] sm:$0xff]  ;;  %v375_v7 = vld [vmem:[#allocation8 + $0x60] sm:$0xff]  ;;  %v358_v8 = vld [vmem:[#allocation5 + $0x60] sm:$0xff]  ;;  %s543_s25 = sshll.u32 %s341_s13, 4  ;;  %s529_s11 = scalar_lea.sflag [#allocation4], %s288_s7  ;;  %s544_s25 = int_to_ptr.vmem [resolvable:$true] %s543_s25 }
  0x65   : > { %734 = vmatpush3.msra.mxu0 %v378_v1  ;;  %769 = vmatpush3.msra.mxu1 %v361_v2  ;;  %v374_v9 = vld [vmem:[#allocation8 + $0x58] sm:$0xff]  ;;  %v357_v10 = vld [vmem:[#allocation5 + $0x58] sm:$0xff]  ;;  %v373_v11 = vld [vmem:[#allocation8 + $0x50] sm:$0xff]  ;;  %s1003_s10 = scalar_lea.vmem %s544_s25, 128  ;;  %s1105_s21 = smov [#allocation9]  }
  0x66   : > { %735 = vmatprep.subr.mxu0 %v1103_v0  ;;  %770 = vmatprep.subr.mxu1 %v1103_v0  ;;  %v356_v12 = vld [vmem:[#allocation5 + $0x50] sm:$0xff]  ;;  %v372_v13 = vld [vmem:[#allocation8 + $0x48] sm:$0xff]  ;;  %v355_v14 = vld [vmem:[#allocation5 + $0x48] sm:$0xff]  ;;  %p1004_p4 = scmp.ne.s32.totalorder %s544_s25, %s1003_s10  ;;  %s1007_s0 = sshll.u32 %s1105_s21, 4  ;;  %s1008_s0 = int_to_ptr.vmem [resolvable:$false] %s1007_s0 }
  0x67   : > { %736 = vmatpush3.msra.mxu0 %v377_v3  ;;  %771 = vmatpush3.msra.mxu1 %v360_v4  ;;  %v371_v15 = vld [vmem:[#allocation8 + $0x40] sm:$0xff]  ;;  %v354_v16 = vld [vmem:[#allocation5 + $0x40] sm:$0xff]  ;;  %v370_v17 = vld [vmem:[#allocation8 + $0x38] sm:$0xff]  ;;  %s1009_s14 = scalar_lea.vmem %s1008_s0, 256  ;;  %p1010_p9 = scmp.lt.s32.totalorder %s544_s25, %s1008_s0 }
  0x68   : > { %737 = vmatprep.subr.mxu0 %v1103_v0  ;;  %772 = vmatprep.subr.mxu1 %v1103_v0  ;;  %v353_v18 = vld [vmem:[#allocation5 + $0x38] sm:$0xff]  ;;  %v369_v19 = vld [vmem:[#allocation8 + $0x30] sm:$0xff]  ;;  %v352_v20 = vld [vmem:[#allocation5 + $0x30] sm:$0xff]  ;;  %p1005_p7 = pnand %p1004_p4, %p1225_p3  ;;  %p1011_p13 = scmp.lt.s32.totalorder %s1009_s14, %s1003_s10 }
  0x69   : > { %738 = vmatpush3.msra.mxu0 %v376_v5  ;;  %773 = vmatpush3.msra.mxu1 %v359_v6  ;;  %v368_v21 = vld [vmem:[#allocation8 + $0x28] sm:$0xff]  ;;  %v351_v22 = vld [vmem:[#allocation5 + $0x28] sm:$0xff]  ;;  %v367_v23 = vld [vmem:[#allocation8 + $0x20] sm:$0xff] }
  0x6a   : > { %739 = vmatprep.subr.mxu0 %v1103_v0  ;;  %774 = vmatprep.subr.mxu1 %v1103_v0  ;;  %v350_v24 = vld [vmem:[#allocation5 + $0x20] sm:$0xff]  ;;  %v366_v25 = vld [vmem:[#allocation8 + $0x18] sm:$0xff]  ;;  %v349_v26 = vld [vmem:[#allocation5 + $0x18] sm:$0xff]  ;;  %p1006_p10 = pneg %p1005_p7  ;;  %p1012_p6 = por %p1011_p13, %p1010_p9 }
  0x6b   : > { %740 = vmatpush3.msra.mxu0 %v375_v7  ;;  %775 = vmatpush3.msra.mxu1 %v358_v8  ;;  %v365_v27 = vld [vmem:[#allocation8 + $0x10] sm:$0xff]  ;;  %v348_v28 = vld [vmem:[#allocation5 + $0x10] sm:$0xff]  ;;  %v364_v29 = vld [vmem:[#allocation8 + $0x8] sm:$0xff] }
  0x6c   : > { %741 = vmatprep.subr.mxu0 %v1103_v0  ;;  %776 = vmatprep.subr.mxu1 %v1103_v0  ;;  %v347_v30 = vld [vmem:[#allocation5 + $0x8] sm:$0xff]  ;;  %v363_v31 = vld [vmem:[#allocation8] sm:$0xff]  ;;  %v346_v32 = vld [vmem:[#allocation5] sm:$0xff]  ;;  %p1013_p5 = pnand %p1012_p6, %p1006_p10 }
  0x6d   : > { %742 = vmatpush3.msra.mxu0 %v374_v9  ;;  %777 = vmatpush3.msra.mxu1 %v357_v10  ;;  %v362_v33 = vld [vmem:[%s303_s27] sm:$0xff]  ;;  %v345_v34 = vld [vmem:[%s290_s1] sm:$0xff] }
  0x6e   : > { %743 = vmatprep.subr.mxu0 %v1103_v0  ;;  %778 = vmatprep.subr.mxu1 %v1103_v0  ;;  %v694_v35 = vld [vmem:[%s1391_s2] ss:$0 sm:$0xff] }
  0x6f   : > { %744 = vmatpush3.msra.mxu0 %v373_v11  ;;  %779 = vmatpush3.msra.mxu1 %v356_v12 }
  0x70   : > { %745 = vmatprep.subr.mxu0 %v1103_v0  ;;  %780 = vmatprep.subr.mxu1 %v1103_v0 }
  0x71   : > { %746 = vmatpush3.msra.mxu0 %v372_v13  ;;  %781 = vmatpush3.msra.mxu1 %v355_v14 }
  0x72   : > { %747 = vmatprep.subr.mxu0 %v1103_v0  ;;  %782 = vmatprep.subr.mxu1 %v1103_v0 }
  0x73   : > { %748 = vmatpush3.msra.mxu0 %v371_v15  ;;  %783 = vmatpush3.msra.mxu1 %v354_v16 }
  0x74   : > { %749 = vmatprep.subr.mxu0 %v1103_v0  ;;  %784 = vmatprep.subr.mxu1 %v1103_v0 }
  0x75   : > { %750 = vmatpush3.msra.mxu0 %v370_v17  ;;  %785 = vmatpush3.msra.mxu1 %v353_v18 }
  0x76   : > { %751 = vmatprep.subr.mxu0 %v1103_v0  ;;  %786 = vmatprep.subr.mxu1 %v1103_v0 }
  0x77   : > { %752 = vmatpush3.msra.mxu0 %v369_v19  ;;  %787 = vmatpush3.msra.mxu1 %v352_v20 }
  0x78   : > { %753 = vmatprep.subr.mxu0 %v1103_v0  ;;  %788 = vmatprep.subr.mxu1 %v1103_v0 }
  0x79   : > { %754 = vmatpush3.msra.mxu0 %v368_v21  ;;  %789 = vmatpush3.msra.mxu1 %v351_v22 }
  0x7a   : > { %755 = vmatprep.subr.mxu0 %v1103_v0  ;;  %790 = vmatprep.subr.mxu1 %v1103_v0 }
  0x7b   : > { %756 = vmatpush3.msra.mxu0 %v367_v23  ;;  %791 = vmatpush3.msra.mxu1 %v350_v24 }
  0x7c   : > { %757 = vmatprep.subr.mxu0 %v1103_v0  ;;  %792 = vmatprep.subr.mxu1 %v1103_v0 }
  0x7d   : > { %758 = vmatpush3.msra.mxu0 %v366_v25  ;;  %793 = vmatpush3.msra.mxu1 %v349_v26 }
  0x7e   : > { %759 = vmatprep.subr.mxu0 %v1103_v0  ;;  %794 = vmatprep.subr.mxu1 %v1103_v0 }
  0x7f   : > { %760 = vmatpush3.msra.mxu0 %v365_v27  ;;  %795 = vmatpush3.msra.mxu1 %v348_v28 }
  0x80   : > { %761 = vmatprep.subr.mxu0 %v1103_v0  ;;  %796 = vmatprep.subr.mxu1 %v1103_v0 }
  0x81   : > { %762 = vmatpush3.msra.mxu0 %v364_v29  ;;  %797 = vmatpush3.msra.mxu1 %v347_v30 }
  0x82   : > { %763 = vmatprep.subr.mxu0 %v1103_v0  ;;  %798 = vmatprep.subr.mxu1 %v1103_v0 }
  0x83   : > { %764 = vmatpush3.msra.mxu0 %v363_v31  ;;  %799 = vmatpush3.msra.mxu1 %v346_v32 }
  0x84   : > { %766 = vmatmul.mubr.f32.vlgmr.msra.gmra.mxu0 %v362_v33  ;;  %801 = vmatmul.mubr.f32.vlgmr.msra.gmra.mxu1 %v345_v34 }
 0x144   : > { %v445_v36 = vpop.f32.mrf.mxu0  ;;  %v522_v37 = vpop.f32.mrf.mxu1 }
 0x145   : > { %v523_v38 = vadd.f32 %v694_v35, %v522_v37 }
 0x146   : > { %v767_v39 = vpop.f32.mrf.mxu0  ;;  %v802_v40 = vpop.f32.mrf.mxu1 }
 0x147   : > { %v526_v41 = vadd.f32 %v523_v38, %v445_v36 }
 0x149   : > { %527 = vst [vmem:[%s341_s13] sm:$0xff] %v526_v41 }
 0x14a   : > { %1016 = shalt.err (!%p1013_p5)
}
 0x14b   : > { %s1017_s12 = scalar_lea.hbm %s541_s30, 128  ;;  %s1021_s8 = scalar_lea.hbm %s1394_s5, 256 }
 0x14c   : > { %p1018_p1 = scmp.ne.s32.totalorder %s541_s30, %s1017_s12  ;;  %p1022_p8 = scmp.lt.s32.totalorder %s541_s30, %s1394_s5 }
 0x14d   : > { %p1023_p2 = scmp.lt.s32.totalorder %s1021_s8, %s1017_s12 }
 0x14e   : > { %p1019_p12 = pnand %p1018_p1, %p1225_p3 }
 0x14f   : > { %p1024_p0 = por %p1023_p2, %p1022_p8 }
 0x150   : > { %p1020_p11 = pneg %p1019_p12 }
 0x152   : > { %p1025_p4 = pnand %p1024_p0, %p1020_p11 }
 0x154   : > { %1028 = shalt.err (!%p1025_p4)
}
 0x155   : > { %815 = dma.vmem_to_hbm [thread:$0]  (%p1225_p3), %s544_s25, 128, %s541_s30, %s529_s11  }
 0x156 PF: > { %s1424_s27 = sld [smem:[#allocation15_spill]]  ;;  %s555_s24 = sand.u32 1, %s1075_s18  }
 0x157   : > { %p1426_p10 = scmp.ge.s32.totalorder %s1095_s23, 2  ;;  %s556_s26 = scalar_lea.sflag [#allocation4], %s555_s24 }
 0x15c   : > { %p1425_p7 = scmp.ne.s32.totalorder %s1424_s27, 0 }
 0x15e   : > { %p832_p9 = pnand %p1426_p10, %p1425_p7 }
 0x160   : > { %p833_p13 = pneg %p832_p9 }
 0x162   : > { %1070 = dma.done.wait (%p833_p13), %s556_s26, 128  }
 0x163   : > { %1072 = vsyncadd (%p833_p13), %s556_s26, 4294967168  ;;  %s22_s23 = sadd.s32 1, %s1095_s23   ;;  %s1427_s15 = sld [smem:[#allocation16_spill]] }
 0x164   : > { %p19_p6 = scmp.ge.s32.totalorder %s22_s23, 4   ;;  %s1428_s18 = smov %s1079_s19 }
 0x165   : > { %s1429_s19 = smov %s1083_s20  ;;  %s1430_s20 = smov %s1235_s29 }
 0x166   : > { %s1431_s21 = smov %s1091_s22  ;;  %21 = sbr.rel (!%p19_p6) target bundleno = 10 (0xa), region = 109 }
 0x169   : > { %s1432_s22 = smov %s1427_s15 }
 0x16b   :  { %561 = vsyncpa [#allocation3], 1 }
 0x16c   :  { %563 = vsyncpa [#allocation3 + $0x1], 1 }
 0x16d   :  { %564 = vsyncpa [#allocation6], 1 }
 0x16e   :  { %565 = vsyncpa [#allocation4], 1 }
 0x16f   :  { %567 = vsyncpa [#allocation4 + $0x1], 1 }

</bundles_post_ra>
